<compile_context>
chip_gen: v5e
topology: v5e:2x2
jax: 0.10.0
libtpu: 0.0.40
codegen_flags: <defaults>
</compile_context>

<pallas_src>
from functools import partial

import jax
import jax.numpy as jnp
from jax import lax
from jax.experimental import pallas as pl
from jax.experimental.pallas import tpu as pltpu

HEAD_DIM = 16  # matches ESA default head_dim=16

# dot_general dimension numbers for A @ B^T (contract last dims) -- native
# MXU-friendly form, no materialized transposes.
_NT = (((1,), (1,)), ((), ()))


def desd_kernel(x_ref, y_ref, wx_ref, bx_ref, wy_ref, by_ref, wvt_ref,
                bvh_ref, s1_ref, s2_ref, o_ref,
                q1_scr, q2_scr, k1_scr, k2_scr, vt_scr,
                *, dim, head_dim):
    """Grid = (batch, head); one head of one batch element per step.

    x_ref, y_ref : (1, N, C)  bf16 token-major inputs
    wx_ref/wy_ref: (C, 3C)    bf16 fused [Wq | Wk | Wv] per stream (out = in@W)
    bx_ref/by_ref: (1, 3C)    f32  fused biases
    wvt_ref      : (2, C, C)  bf16 fused value projection, pre-transposed halves
    bvh_ref      : (H, hd)    f32  value-projection bias, per-head rows
    s1_ref/s2_ref: (H, C)     f32  conv-mix + residual + scale folded into
                                   per-head query-channel scalings
    o_ref        : (1, 1, N, hd)   per-(batch, head) output block
    scratch      : q1/q2 (N, C) f32, k1/k2 (N, C) bf16, vT (C, N) bf16
    """
    f32 = jnp.float32
    bf16 = jnp.bfloat16
    C = dim
    h = pl.program_id(1)

    # ---- per-batch shared work: fused projections, computed once at h == 0 --
    @pl.when(h == 0)
    def _project():
        x = x_ref[0]                                           # (N, C) bf16
        y = y_ref[0]
        px = jnp.dot(x, wx_ref[...], preferred_element_type=f32) + bx_ref[...]
        py = jnp.dot(y, wy_ref[...], preferred_element_type=f32) + by_ref[...]
        q1_scr[...] = px[:, :C]                                # f32 (for scaling)
        q2_scr[...] = py[:, :C]
        k1_scr[...] = px[:, C:2 * C].astype(bf16)
        k2_scr[...] = py[:, C:2 * C].astype(bf16)
        v1 = px[:, 2 * C:].astype(bf16)
        v2 = py[:, 2 * C:].astype(bf16)
        # Fused value projection emitted directly transposed: vT = (C, N).
        # (value bias is added post-attention, see below)
        vT = (lax.dot_general(wvt_ref[0], v1, _NT, preferred_element_type=f32)
              + lax.dot_general(wvt_ref[1], v2, _NT, preferred_element_type=f32))
        vt_scr[...] = vT.astype(bf16)

    # ---- per-head attention --------------------------------------------------
    s1 = s1_ref[pl.ds(h, 1), :]                                # (1, C) f32
    s2 = s2_ref[pl.ds(h, 1), :]
    qm1 = (q1_scr[...] * s1).astype(bf16)                      # f32 scale, bf16 MXU
    qm2 = (q2_scr[...] * s2).astype(bf16)
    logits = (lax.dot_general(qm1, k1_scr[...], _NT, preferred_element_type=f32)
              + lax.dot_general(qm2, k2_scr[...], _NT, preferred_element_type=f32))

    # Softmax over keys, in f32 (conv bias cancels along this axis).
    e = jnp.exp(logits - jnp.max(logits, axis=-1, keepdims=True))
    attn = (e * pl.reciprocal(jnp.sum(e, axis=-1, keepdims=True), approx=True)
            ).astype(bf16)

    # out_h = attn @ v_h, computed as attn (N,N) @ vT_h^T via A@B^T -> (N, hd).
    start = pl.multiple_of(h * head_dim, head_dim)
    vhT = vt_scr[pl.ds(start, head_dim), :]                    # (hd, N) bf16
    oh = lax.dot_general(attn, vhT, _NT, preferred_element_type=f32)
    # Value bias folded in after attention (softmax rows sum to 1).
    o_ref[0, 0] = (oh + bvh_ref[pl.ds(h, 1), :]).astype(o_ref.dtype)


def desd_forward(xx, yy, params):
    """xx, yy: (b, c, h, w) float32. Returns (b, c, h, w) float32."""
    b, c, hh, ww = xx.shape
    N = hh * ww
    C = c
    assert C % HEAD_DIM == 0, "dim must be a multiple of head_dim"
    H = C // HEAD_DIM
    hd = HEAD_DIM
    wqkv, bqkv, wv, bv, wconv, bconv = params
    del bconv  # constant along the softmax axis -> no effect on the output

    f32 = jnp.float32
    bf16 = jnp.bfloat16

    # NCHW -> (B, N, C) token layout; bf16 MXU operands (f32 accumulation).
    x = xx.reshape(b, C, N).transpose(0, 2, 1).astype(bf16)
    y = yy.reshape(b, C, N).transpose(0, 2, 1).astype(bf16)

    # Fused [q | k | v] projection per stream: one (C, 3C) matmul each.
    wx = jnp.concatenate([wqkv[0], wqkv[1], wqkv[2]], axis=1).astype(bf16)
    wy = jnp.concatenate([wqkv[3], wqkv[4], wqkv[5]], axis=1).astype(bf16)
    bx = jnp.concatenate([bqkv[0], bqkv[1], bqkv[2]]).reshape(1, 3 * C).astype(f32)
    by = jnp.concatenate([bqkv[3], bqkv[4], bqkv[5]]).reshape(1, 3 * C).astype(f32)

    # Fused value projection, pre-transposed so the kernel emits vT = (C, N).
    wvt = jnp.stack([wv[:C].T, wv[C:].T]).astype(bf16)          # (2, C, C)
    # Value bias applied on the post-attention (N, hd) path, per-head rows.
    bvh = bv.reshape(H, hd).astype(f32)                         # (H, hd)

    # Fold 1x1 conv head mix + residual (x1[h] + y1[h]) + attention scale into
    # per-output-head query-channel scalings:
    #   s1[h, o*hd:(o+1)*hd] = scale * (wconv[h, o]     + [o == h])
    #   s2[h, o*hd:(o+1)*hd] = scale * (wconv[h, H + o] + [o == h])
    eye = jnp.eye(H, dtype=f32)
    wmix = wconv.astype(f32) + jnp.concatenate([eye, eye], axis=1)   # (H, 2H)
    scale = jnp.float32(hd ** -0.5)
    s1 = jnp.repeat(wmix[:, :H] * scale, hd, axis=1)            # (H, C)
    s2 = jnp.repeat(wmix[:, H:] * scale, hd, axis=1)            # (H, C)

    kernel = partial(desd_kernel, dim=C, head_dim=hd)
    out4 = pl.pallas_call(
        kernel,
        out_shape=jax.ShapeDtypeStruct((b, H, N, hd), f32),
        grid=(b, H),
        in_specs=[
            pl.BlockSpec((1, N, C), lambda i, h: (i, 0, 0)),      # x
            pl.BlockSpec((1, N, C), lambda i, h: (i, 0, 0)),      # y
            pl.BlockSpec((C, 3 * C), lambda i, h: (0, 0)),        # wx
            pl.BlockSpec((1, 3 * C), lambda i, h: (0, 0)),        # bx
            pl.BlockSpec((C, 3 * C), lambda i, h: (0, 0)),        # wy
            pl.BlockSpec((1, 3 * C), lambda i, h: (0, 0)),        # by
            pl.BlockSpec((2, C, C), lambda i, h: (0, 0, 0)),      # wvt
            pl.BlockSpec((H, hd), lambda i, h: (0, 0)),           # bvh
            pl.BlockSpec((H, C), lambda i, h: (0, 0)),            # s1
            pl.BlockSpec((H, C), lambda i, h: (0, 0)),            # s2
        ],
        out_specs=pl.BlockSpec((1, 1, N, hd), lambda i, h: (i, h, 0, 0)),
        scratch_shapes=[
            pltpu.VMEM((N, C), f32),    # q1
            pltpu.VMEM((N, C), f32),    # q2
            pltpu.VMEM((N, C), bf16),   # k1
            pltpu.VMEM((N, C), bf16),   # k2
            pltpu.VMEM((C, N), bf16),   # vT
        ],
        compiler_params=pltpu.CompilerParams(
            dimension_semantics=("parallel", "arbitrary"),
            vmem_limit_bytes=56 * 1024 * 1024),
    )(x, y, wx, bx, wy, by, wvt, bvh, s1, s2)

    # (B, H, N, hd) -> (B, H, hd, N) -> (B, C, h, w): single wrapper transpose.
    return out4.transpose(0, 1, 3, 2).reshape(b, C, hh, ww)


def desd_reference(xx, yy, params):
    """Pure-JAX reference mirroring the PyTorch forward (sr_ratio=1)."""
    wqkv, bqkv, wv, bv, wconv, bconv = params
    b, c, h, w = xx.shape
    N, C = h * w, c
    H, hd = C // HEAD_DIM, HEAD_DIM
    scale = hd ** -0.5
    hp = jax.lax.Precision.HIGHEST

    x = xx.reshape(b, c, N).transpose(0, 2, 1)
    y = yy.reshape(b, c, N).transpose(0, 2, 1)

    def esa(z, wq, bq, wk, bk, wv_, bv_):
        q = jnp.dot(z, wq, precision=hp) + bq
        k = jnp.dot(z, wk, precision=hp) + bk
        v = jnp.dot(z, wv_, precision=hp) + bv_
        q = q.reshape(b, N, H, hd).transpose(0, 2, 1, 3)      # (B,H,N,hd)
        k = k.reshape(b, N, H, hd).transpose(0, 2, 3, 1)      # (B,H,hd,N)
        attn = jnp.einsum('bhnd,bhdm->bhnm', q, k, precision=hp) * scale
        return attn, v

    x1, v1 = esa(x, wqkv[0], bqkv[0], wqkv[1], bqkv[1], wqkv[2], bqkv[2])
    y1, v2 = esa(y, wqkv[3], bqkv[3], wqkv[4], bqkv[4], wqkv[5], bqkv[5])

    xy = x1 + y1
    cat = jnp.concatenate([x1, y1], axis=1)                   # (B,2H,N,N)
    cc = jnp.einsum('oc,bcnm->bonm', wconv, cat, precision=hp) \
        + bconv[None, :, None, None]
    attn = jax.nn.softmax(xy + cc, axis=-1)

    cv = jnp.concatenate([v1, v2], axis=-1)                   # (B,N,2C)
    v = jnp.dot(cv, wv, precision=hp) + bv                    # (B,N,C)
    v = v.reshape(b, N, H, hd).transpose(0, 2, 1, 3)          # (B,H,N,hd)

    out = jnp.einsum('bhnm,bhmd->bhnd', attn, v, precision=hp)
    out = out.transpose(0, 2, 1, 3).reshape(b, N, C)
    return out.transpose(0, 2, 1).reshape(b, C, h, w)


if __name__ == "__main__":
    # Small deterministic configuration: dim=32 -> num_heads=2, h=w=4 -> N=16.
    B, C, Hsp, Wsp = 2, 32, 4, 4
    num_heads = C // HEAD_DIM

    key = jax.random.PRNGKey(0)
    ks = jax.random.split(key, 8)
    xx = jax.random.normal(ks[0], (B, C, Hsp, Wsp), jnp.float32)
    yy = jax.random.normal(ks[1], (B, C, Hsp, Wsp), jnp.float32)

    # Parameters stored as "already-transposed" weights: out = in @ W + b.
    #   wqkv[0..2] = esa1 {q,k,v},  wqkv[3..5] = esa2 {q,k,v}
    wqkv = 0.1 * jax.random.normal(ks[2], (6, C, C), jnp.float32)
    bqkv = 0.1 * jax.random.normal(ks[3], (6, C), jnp.float32)
    wv = 0.1 * jax.random.normal(ks[4], (2 * C, C), jnp.float32)     # Linear(2C,C)
    bv = 0.1 * jax.random.normal(ks[5], (1, C), jnp.float32)
    wconv = 0.1 * jax.random.normal(ks[6], (num_heads, 2 * num_heads),
                                    jnp.float32)                     # Conv2d 1x1
    bconv = 0.1 * jax.random.normal(ks[7], (num_heads,), jnp.float32)
    params = (wqkv, bqkv, wv, bv, wconv, bconv)

    out = desd_forward(xx, yy, params)
    jax.block_until_ready(out)

    ref = desd_reference(xx, yy, params)
    jax.block_until_ready(ref)

    assert out.shape == (B, C, Hsp, Wsp)
    err = float(jnp.max(jnp.abs(out - ref)))
    # Tolerance sized for bf16 MXU operands (f32 accumulation, f32 softmax)
    # against the HIGHEST-precision f32 reference.
    if err > 3e-2:
        raise AssertionError(f"mismatch: max abs err = {err}")
    print("KERNEL_OK")
</pallas_src>

<mosaic_0001>
module attributes {stable_mosaic.version = 11 : i64} {
  func.func @desd_kernel(%arg0: i32, %arg1: i32, %arg2: memref<1x16x32xbf16, #tpu.memory_space<vmem>>, %arg3: memref<1x16x32xbf16, #tpu.memory_space<vmem>>, %arg4: memref<32x96xbf16, #tpu.memory_space<vmem>>, %arg5: memref<1x96xf32, #tpu.memory_space<vmem>>, %arg6: memref<32x96xbf16, #tpu.memory_space<vmem>>, %arg7: memref<1x96xf32, #tpu.memory_space<vmem>>, %arg8: memref<2x32x32xbf16, #tpu.memory_space<vmem>>, %arg9: memref<2x16xf32, #tpu.memory_space<vmem>>, %arg10: memref<2x32xf32, #tpu.memory_space<vmem>>, %arg11: memref<2x32xf32, #tpu.memory_space<vmem>>, %arg12: memref<1x1x16x16xf32, #tpu.memory_space<vmem>>, %arg13: memref<16x32xf32, #tpu.memory_space<vmem>>, %arg14: memref<16x32xf32, #tpu.memory_space<vmem>>, %arg15: memref<16x32xbf16, #tpu.memory_space<vmem>>, %arg16: memref<16x32xbf16, #tpu.memory_space<vmem>>, %arg17: memref<32x16xbf16, #tpu.memory_space<vmem>>) attributes {dimension_semantics = [#tpu.dimension_semantics<parallel>, #tpu.dimension_semantics<arbitrary>], iteration_bounds = array<i64: 2, 2>, scalar_prefetch = 0 : i64, scratch_operands = 5 : i64, tpu.core_type = #tpu.core_type<tc>, window_params = [{transform_indices = @transform_0, window_bounds = array<i64: 1, 16, 32>}, {transform_indices = @transform_1, window_bounds = array<i64: 1, 16, 32>}, {pipeline_mode = #tpu.pipeline_mode<synchronous>, transform_indices = @transform_2, window_bounds = array<i64: 32, 96>}, {pipeline_mode = #tpu.pipeline_mode<synchronous>, transform_indices = @transform_3, window_bounds = array<i64: 1, 96>}, {pipeline_mode = #tpu.pipeline_mode<synchronous>, transform_indices = @transform_4, window_bounds = array<i64: 32, 96>}, {pipeline_mode = #tpu.pipeline_mode<synchronous>, transform_indices = @transform_5, window_bounds = array<i64: 1, 96>}, {pipeline_mode = #tpu.pipeline_mode<synchronous>, transform_indices = @transform_6, window_bounds = array<i64: 2, 32, 32>}, {pipeline_mode = #tpu.pipeline_mode<synchronous>, transform_indices = @transform_7, window_bounds = array<i64: 2, 16>}, {pipeline_mode = #tpu.pipeline_mode<synchronous>, transform_indices = @transform_8, window_bounds = array<i64: 2, 32>}, {pipeline_mode = #tpu.pipeline_mode<synchronous>, transform_indices = @transform_9, window_bounds = array<i64: 2, 32>}, {transform_indices = @transform_10, window_bounds = array<i64: 1, 1, 16, 16>}]} {
    %c0_i32 = arith.constant 0 : i32
    %0 = arith.cmpi eq, %arg1, %c0_i32 : i32
    %1 = arith.extui %0 : i1 to i32
    %c0_i32_0 = arith.constant 0 : i32
    %2 = arith.cmpi ne, %1, %c0_i32_0 : i32
    scf.if %2 {
      %c0_20 = arith.constant 0 : index
      %c0_21 = arith.constant 0 : index
      %c0_22 = arith.constant 0 : index
      %43 = vector.load %arg2[%c0_20, %c0_21, %c0_22] : memref<1x16x32xbf16, #tpu.memory_space<vmem>>, vector<1x16x32xbf16>
      %44 = vector.shape_cast %43 : vector<1x16x32xbf16> to vector<16x32xbf16>
      %c0_23 = arith.constant 0 : index
      %c0_24 = arith.constant 0 : index
      %c0_25 = arith.constant 0 : index
      %45 = vector.load %arg3[%c0_23, %c0_24, %c0_25] : memref<1x16x32xbf16, #tpu.memory_space<vmem>>, vector<1x16x32xbf16>
      %46 = vector.shape_cast %45 : vector<1x16x32xbf16> to vector<16x32xbf16>
      %c0_26 = arith.constant 0 : index
      %c0_27 = arith.constant 0 : index
      %47 = vector.load %arg4[%c0_26, %c0_27] : memref<32x96xbf16, #tpu.memory_space<vmem>>, vector<32x96xbf16>
      %cst_28 = arith.constant dense<0.000000e+00> : vector<16x96xf32>
      %48 = tpu.matmul %44, %47, %cst_28 {dimension_numbers = #tpu.dot_dimension_numbers<[1], [0], [0], [1], [0, 0, 1, 1], [], []>} : vector<16x32xbf16>, vector<32x96xbf16>, vector<16x96xf32> -> vector<16x96xf32>
      %c0_29 = arith.constant 0 : index
      %c0_30 = arith.constant 0 : index
      %49 = vector.load %arg5[%c0_29, %c0_30] : memref<1x96xf32, #tpu.memory_space<vmem>>, vector<1x96xf32>
      %50 = vector.broadcast %49 : vector<1x96xf32> to vector<16x96xf32>
      %51 = arith.addf %48, %50 : vector<16x96xf32>
      %c0_31 = arith.constant 0 : index
      %c0_32 = arith.constant 0 : index
      %52 = vector.load %arg6[%c0_31, %c0_32] : memref<32x96xbf16, #tpu.memory_space<vmem>>, vector<32x96xbf16>
      %cst_33 = arith.constant dense<0.000000e+00> : vector<16x96xf32>
      %53 = tpu.matmul %46, %52, %cst_33 {dimension_numbers = #tpu.dot_dimension_numbers<[1], [0], [0], [1], [0, 0, 1, 1], [], []>} : vector<16x32xbf16>, vector<32x96xbf16>, vector<16x96xf32> -> vector<16x96xf32>
      %c0_34 = arith.constant 0 : index
      %c0_35 = arith.constant 0 : index
      %54 = vector.load %arg7[%c0_34, %c0_35] : memref<1x96xf32, #tpu.memory_space<vmem>>, vector<1x96xf32>
      %55 = vector.broadcast %54 : vector<1x96xf32> to vector<16x96xf32>
      %56 = arith.addf %53, %55 : vector<16x96xf32>
      %57 = vector.extract_strided_slice %51 {offsets = [0, 0], sizes = [16, 32], strides = [1, 1]} : vector<16x96xf32> to vector<16x32xf32>
      %c0_36 = arith.constant 0 : index
      %c0_37 = arith.constant 0 : index
      %58 = vector.load %arg13[%c0_36, %c0_37] : memref<16x32xf32, #tpu.memory_space<vmem>>, vector<16x32xf32>
      tpu.vector_store %arg13[%c0_36, %c0_37], %57 {strides = array<i32>} : memref<16x32xf32, #tpu.memory_space<vmem>>, vector<16x32xf32>,
      %59 = vector.extract_strided_slice %56 {offsets = [0, 0], sizes = [16, 32], strides = [1, 1]} : vector<16x96xf32> to vector<16x32xf32>
      %c0_38 = arith.constant 0 : index
      %c0_39 = arith.constant 0 : index
      %60 = vector.load %arg14[%c0_38, %c0_39] : memref<16x32xf32, #tpu.memory_space<vmem>>, vector<16x32xf32>
      tpu.vector_store %arg14[%c0_38, %c0_39], %59 {strides = array<i32>} : memref<16x32xf32, #tpu.memory_space<vmem>>, vector<16x32xf32>,
      %61 = vector.extract_strided_slice %51 {offsets = [0, 32], sizes = [16, 32], strides = [1, 1]} : vector<16x96xf32> to vector<16x32xf32>
      %62 = arith.truncf %61 : vector<16x32xf32> to vector<16x32xbf16>
      %c0_40 = arith.constant 0 : index
      %c0_41 = arith.constant 0 : index
      %63 = vector.load %arg15[%c0_40, %c0_41] : memref<16x32xbf16, #tpu.memory_space<vmem>>, vector<16x32xbf16>
      tpu.vector_store %arg15[%c0_40, %c0_41], %62 {strides = array<i32>} : memref<16x32xbf16, #tpu.memory_space<vmem>>, vector<16x32xbf16>,
      %64 = vector.extract_strided_slice %56 {offsets = [0, 32], sizes = [16, 32], strides = [1, 1]} : vector<16x96xf32> to vector<16x32xf32>
      %65 = arith.truncf %64 : vector<16x32xf32> to vector<16x32xbf16>
      %c0_42 = arith.constant 0 : index
      %c0_43 = arith.constant 0 : index
      %66 = vector.load %arg16[%c0_42, %c0_43] : memref<16x32xbf16, #tpu.memory_space<vmem>>, vector<16x32xbf16>
      tpu.vector_store %arg16[%c0_42, %c0_43], %65 {strides = array<i32>} : memref<16x32xbf16, #tpu.memory_space<vmem>>, vector<16x32xbf16>,
      %67 = vector.extract_strided_slice %51 {offsets = [0, 64], sizes = [16, 32], strides = [1, 1]} : vector<16x96xf32> to vector<16x32xf32>
      %68 = arith.truncf %67 : vector<16x32xf32> to vector<16x32xbf16>
      %69 = vector.extract_strided_slice %56 {offsets = [0, 64], sizes = [16, 32], strides = [1, 1]} : vector<16x96xf32> to vector<16x32xf32>
      %70 = arith.truncf %69 : vector<16x32xf32> to vector<16x32xbf16>
      %c0_44 = arith.constant 0 : index
      %c0_45 = arith.constant 0 : index
      %c0_46 = arith.constant 0 : index
      %71 = vector.load %arg8[%c0_44, %c0_45, %c0_46] : memref<2x32x32xbf16, #tpu.memory_space<vmem>>, vector<1x32x32xbf16>
      %72 = vector.shape_cast %71 : vector<1x32x32xbf16> to vector<32x32xbf16>
      %cst_47 = arith.constant dense<0.000000e+00> : vector<32x16xf32>
      %73 = tpu.matmul %72, %68, %cst_47 {dimension_numbers = #tpu.dot_dimension_numbers<[1], [1], [0], [0], [0, 0, 1, 0], [], []>} : vector<32x32xbf16>, vector<16x32xbf16>, vector<32x16xf32> -> vector<32x16xf32>
      %c1 = arith.constant 1 : index
      %c0_48 = arith.constant 0 : index
      %c0_49 = arith.constant 0 : index
      %74 = vector.load %arg8[%c1, %c0_48, %c0_49] : memref<2x32x32xbf16, #tpu.memory_space<vmem>>, vector<1x32x32xbf16>
      %75 = vector.shape_cast %74 : vector<1x32x32xbf16> to vector<32x32xbf16>
      %cst_50 = arith.constant dense<0.000000e+00> : vector<32x16xf32>
      %76 = tpu.matmul %75, %70, %cst_50 {dimension_numbers = #tpu.dot_dimension_numbers<[1], [1], [0], [0], [0, 0, 1, 0], [], []>} : vector<32x32xbf16>, vector<16x32xbf16>, vector<32x16xf32> -> vector<32x16xf32>
      %77 = arith.addf %73, %76 : vector<32x16xf32>
      %78 = arith.truncf %77 : vector<32x16xf32> to vector<32x16xbf16>
      %c0_51 = arith.constant 0 : index
      %c0_52 = arith.constant 0 : index
      %79 = vector.load %arg17[%c0_51, %c0_52] : memref<32x16xbf16, #tpu.memory_space<vmem>>, vector<32x16xbf16>
      tpu.vector_store %arg17[%c0_51, %c0_52], %78 {strides = array<i32>} : memref<32x16xbf16, #tpu.memory_space<vmem>>, vector<32x16xbf16>,
    } else {
    }
    %3 = arith.index_cast %arg1 : i32 to index
    %c0 = arith.constant 0 : index
    %4 = vector.load %arg10[%3, %c0] : memref<2x32xf32, #tpu.memory_space<vmem>>, vector<1x32xf32>
    %5 = arith.index_cast %arg1 : i32 to index
    %c0_1 = arith.constant 0 : index
    %6 = vector.load %arg11[%5, %c0_1] : memref<2x32xf32, #tpu.memory_space<vmem>>, vector<1x32xf32>
    %c0_2 = arith.constant 0 : index
    %c0_3 = arith.constant 0 : index
    %7 = vector.load %arg13[%c0_2, %c0_3] : memref<16x32xf32, #tpu.memory_space<vmem>>, vector<16x32xf32>
    %8 = vector.broadcast %4 : vector<1x32xf32> to vector<16x32xf32>
    %9 = arith.mulf %7, %8 : vector<16x32xf32>
    %10 = arith.truncf %9 : vector<16x32xf32> to vector<16x32xbf16>
    %c0_4 = arith.constant 0 : index
    %c0_5 = arith.constant 0 : index
    %11 = vector.load %arg14[%c0_4, %c0_5] : memref<16x32xf32, #tpu.memory_space<vmem>>, vector<16x32xf32>
    %12 = vector.broadcast %6 : vector<1x32xf32> to vector<16x32xf32>
    %13 = arith.mulf %11, %12 : vector<16x32xf32>
    %14 = arith.truncf %13 : vector<16x32xf32> to vector<16x32xbf16>
    %c0_6 = arith.constant 0 : index
    %c0_7 = arith.constant 0 : index
    %15 = vector.load %arg15[%c0_6, %c0_7] : memref<16x32xbf16, #tpu.memory_space<vmem>>, vector<16x32xbf16>
    %cst = arith.constant dense<0.000000e+00> : vector<16x16xf32>
    %16 = tpu.matmul %10, %15, %cst {dimension_numbers = #tpu.dot_dimension_numbers<[1], [1], [0], [0], [0, 0, 1, 0], [], []>} : vector<16x32xbf16>, vector<16x32xbf16>, vector<16x16xf32> -> vector<16x16xf32>
    %c0_8 = arith.constant 0 : index
    %c0_9 = arith.constant 0 : index
    %17 = vector.load %arg16[%c0_8, %c0_9] : memref<16x32xbf16, #tpu.memory_space<vmem>>, vector<16x32xbf16>
    %cst_10 = arith.constant dense<0.000000e+00> : vector<16x16xf32>
    %18 = tpu.matmul %14, %17, %cst_10 {dimension_numbers = #tpu.dot_dimension_numbers<[1], [1], [0], [0], [0, 0, 1, 0], [], []>} : vector<16x32xbf16>, vector<16x32xbf16>, vector<16x16xf32> -> vector<16x16xf32>
    %19 = arith.addf %16, %18 : vector<16x16xf32>
    %cst_11 = arith.constant dense<0xFF800000> : vector<16xf32>
    %20 = vector.multi_reduction <maximumf>, %19, %cst_11 [1] : vector<16x16xf32> to vector<16xf32>
    %21 = vector.shape_cast %20 : vector<16xf32> to vector<16x1xf32>
    %22 = vector.broadcast %21 : vector<16x1xf32> to vector<16x16xf32>
    %23 = arith.subf %19, %22 : vector<16x16xf32>
    %24 = math.exp %23 : vector<16x16xf32>
    %cst_12 = arith.constant dense<0.000000e+00> : vector<16xf32>
    %25 = vector.multi_reduction <add>, %24, %cst_12 [1] : vector<16x16xf32> to vector<16xf32>
    %26 = vector.shape_cast %25 : vector<16xf32> to vector<16x1xf32>
    %27 = tpu.reciprocal %26 {approx = true} : vector<16x1xf32> -> vector<16x1xf32>
    %28 = vector.broadcast %27 : vector<16x1xf32> to vector<16x16xf32>
    %29 = arith.mulf %24, %28 : vector<16x16xf32>
    %30 = arith.truncf %29 : vector<16x16xf32> to vector<16x16xbf16>
    %c16_i32 = arith.constant 16 : i32
    %31 = arith.muli %arg1, %c16_i32 : i32
    %32 = tpu.assume_multiple %31, 16 : i32
    %33 = arith.index_cast %32 : i32 to index
    %c0_13 = arith.constant 0 : index
    %34 = vector.load %arg17[%33, %c0_13] : memref<32x16xbf16, #tpu.memory_space<vmem>>, vector<16x16xbf16>
    %cst_14 = arith.constant dense<0.000000e+00> : vector<16x16xf32>
    %35 = tpu.matmul %30, %34, %cst_14 {dimension_numbers = #tpu.dot_dimension_numbers<[1], [1], [0], [0], [0, 0, 1, 0], [], []>} : vector<16x16xbf16>, vector<16x16xbf16>, vector<16x16xf32> -> vector<16x16xf32>
    %36 = arith.index_cast %arg1 : i32 to index
    %c0_15 = arith.constant 0 : index
    %37 = vector.load %arg9[%36, %c0_15] : memref<2x16xf32, #tpu.memory_space<vmem>>, vector<1x16xf32>
    %38 = vector.broadcast %37 : vector<1x16xf32> to vector<16x16xf32>
    %39 = arith.addf %35, %38 : vector<16x16xf32>
    %c0_16 = arith.constant 0 : index
    %c0_17 = arith.constant 0 : index
    %c0_18 = arith.constant 0 : index
    %c0_19 = arith.constant 0 : index
    %40 = vector.load %arg12[%c0_16, %c0_17, %c0_18, %c0_19] : memref<1x1x16x16xf32, #tpu.memory_space<vmem>>, vector<1x1x16x16xf32>
    %41 = vector.shape_cast %40 : vector<1x1x16x16xf32> to vector<16x16xf32>
    %42 = vector.shape_cast %39 : vector<16x16xf32> to vector<1x1x16x16xf32>
    tpu.vector_store %arg12[%c0_16, %c0_17, %c0_18, %c0_19], %42 {strides = array<i32>} : memref<1x1x16x16xf32, #tpu.memory_space<vmem>>, vector<1x1x16x16xf32>,
    return
  }
  func.func @transform_0(%arg0: i32, %arg1: i32) -> (i32, i32, i32) {
    %c0_i32 = arith.constant 0 : i32
    %c0_i32_0 = arith.constant 0 : i32
    %c0_i32_1 = arith.constant 0 : i32
    return %arg0, %c0_i32, %c0_i32_0 : i32, i32, i32
  }
  func.func @transform_1(%arg0: i32, %arg1: i32) -> (i32, i32, i32) {
    %c0_i32 = arith.constant 0 : i32
    %c0_i32_0 = arith.constant 0 : i32
    %c0_i32_1 = arith.constant 0 : i32
    return %arg0, %c0_i32, %c0_i32_0 : i32, i32, i32
  }
  func.func @transform_2(%arg0: i32, %arg1: i32) -> (i32, i32) {
    %c0_i32 = arith.constant 0 : i32
    %c0_i32_0 = arith.constant 0 : i32
    %c0_i32_1 = arith.constant 0 : i32
    return %c0_i32, %c0_i32_0 : i32, i32
  }
  func.func @transform_3(%arg0: i32, %arg1: i32) -> (i32, i32) {
    %c0_i32 = arith.constant 0 : i32
    %c0_i32_0 = arith.constant 0 : i32
    %c0_i32_1 = arith.constant 0 : i32
    return %c0_i32, %c0_i32_0 : i32, i32
  }
  func.func @transform_4(%arg0: i32, %arg1: i32) -> (i32, i32) {
    %c0_i32 = arith.constant 0 : i32
    %c0_i32_0 = arith.constant 0 : i32
    %c0_i32_1 = arith.constant 0 : i32
    return %c0_i32, %c0_i32_0 : i32, i32
  }
  func.func @transform_5(%arg0: i32, %arg1: i32) -> (i32, i32) {
    %c0_i32 = arith.constant 0 : i32
    %c0_i32_0 = arith.constant 0 : i32
    %c0_i32_1 = arith.constant 0 : i32
    return %c0_i32, %c0_i32_0 : i32, i32
  }
  func.func @transform_6(%arg0: i32, %arg1: i32) -> (i32, i32, i32) {
    %c0_i32 = arith.constant 0 : i32
    %c0_i32_0 = arith.constant 0 : i32
    %c0_i32_1 = arith.constant 0 : i32
    %c0_i32_2 = arith.constant 0 : i32
    return %c0_i32, %c0_i32_0, %c0_i32_1 : i32, i32, i32
  }
  func.func @transform_7(%arg0: i32, %arg1: i32) -> (i32, i32) {
    %c0_i32 = arith.constant 0 : i32
    %c0_i32_0 = arith.constant 0 : i32
    %c0_i32_1 = arith.constant 0 : i32
    return %c0_i32, %c0_i32_0 : i32, i32
  }
  func.func @transform_8(%arg0: i32, %arg1: i32) -> (i32, i32) {
    %c0_i32 = arith.constant 0 : i32
    %c0_i32_0 = arith.constant 0 : i32
    %c0_i32_1 = arith.constant 0 : i32
    return %c0_i32, %c0_i32_0 : i32, i32
  }
  func.func @transform_9(%arg0: i32, %arg1: i32) -> (i32, i32) {
    %c0_i32 = arith.constant 0 : i32
    %c0_i32_0 = arith.constant 0 : i32
    %c0_i32_1 = arith.constant 0 : i32
    return %c0_i32, %c0_i32_0 : i32, i32
  }
  func.func @transform_10(%arg0: i32, %arg1: i32) -> (i32, i32, i32, i32) {
    %c0_i32 = arith.constant 0 : i32
    %c0_i32_0 = arith.constant 0 : i32
    %c0_i32_1 = arith.constant 0 : i32
    return %arg0, %arg1, %c0_i32, %c0_i32_0 : i32, i32, i32, i32
  }
}

</mosaic_0001>

<bundles_post_ra>
// kernel: tpu_custom_call.1
= control target key start
LH: loop header
LB: loop body
LE: loop exit
PB: predicated region body
PF: predicated region fallthrough
CT: control target
= control target key end

     0   :  { %s2056_s0 = inlined_call_operand.hbm [shape: bf16[2,16,32], index: 0, kind: input, shape index: {}]   ;;  %s2057_s1 = inlined_call_operand.hbm [shape: bf16[2,16,32], index: 1, kind: input, shape index: {}]   ;;  %s2058_s2 = inlined_call_operand.hbm [shape: bf16[32,96], index: 2, kind: input, shape index: {}]   ;;  %s2059_s3 = inlined_call_operand.hbm [shape: f32[1,96], index: 3, kind: input, shape index: {}]   ;;  %s2060_s4 = inlined_call_operand.hbm [shape: bf16[32,96], index: 4, kind: input, shape index: {}]   ;;  %s2061_s5 = inlined_call_operand.hbm [shape: f32[1,96], index: 5, kind: input, shape index: {}]   ;;  %s2062_s6 = inlined_call_operand.hbm [shape: bf16[2,32,32], index: 6, kind: input, shape index: {}]   ;;  %s2063_s7 = inlined_call_operand.vmem [shape: f32[2,16], index: 7, kind: input, shape index: {}]   ;;  %s2064_s8 = inlined_call_operand.vmem [shape: f32[2,32], index: 8, kind: input, shape index: {}]   ;;  %s2065_s9 = inlined_call_operand.vmem [shape: f32[2,32], index: 9, kind: input, shape index: {}]   ;;  %s2066_s10 = inlined_call_operand.hbm [shape: f32[2,2,16,16], index: 10, kind: output, shape index: {}]  }
   0x1   :  { %2079 = sst [smem:[#allocation33_spill]] %s2058_s2 }
   0x2   :  { %2080 = sst [smem:[#allocation34_spill]] %s2059_s3 }
   0x3   :  { %2081 = sst [smem:[#allocation35_spill]] %s2060_s4 }
   0x4   :  { %2082 = sst [smem:[#allocation36_spill]] %s2061_s5 }
   0x5   :  { %2083 = sst [smem:[#allocation37_spill]] %s2062_s6 }
   0x6   :  { %2084 = sst [smem:[#allocation38_spill]] %s2063_s7 }
   0x7   :  { %2085 = sst [smem:[#allocation39_spill]] %s2064_s8 }
   0x8   :  { %2086 = sst [smem:[#allocation40_spill]] %s2065_s9 }
   0x9   :  { %2087 = sst [smem:[#allocation41_spill]] %s2066_s10 }
   0xa   :  { %15 = vsyncpa [#allocation8], 0 }
   0xb   :  { %17 = vsyncpa [#allocation8 + $0x1], 0 }
   0xc   :  { %18 = vsyncpa [#allocation11], 0 }
   0xd   :  { %20 = vsyncpa [#allocation11 + $0x1], 0 }
   0xe   :  { %21 = vsyncpa [#allocation14], 0 }
   0xf   :  { %22 = vsyncpa [#allocation17], 0 }
  0x10   :  { %23 = vsyncpa [#allocation9], 0 }
  0x11   :  { %25 = vsyncpa [#allocation9 + $0x1], 0  ;;  %s1753_s13 = smov 0   ;;  %s1755_s14 = smov 0  }
  0x12   :  { %s1757_s15 = smov 0   ;;  %s1759_s16 = smov 0  }
  0x13   :  { %s1761_s17 = smov 0   ;;  %s1763_s18 = smov 0  }
  0x14   :  { %s1765_s19 = smov 0   ;;  %s1767_s20 = smov 0  }
  0x15   :  { %s1769_s21 = smov 0   ;;  %s1771_s22 = smov 0  }
  0x16   :  { %s1773_s23 = smov 0  }
  0x17 LB: > { %2088 = sst [smem:[#allocation26_spill]] %s1645_s13  ;;  %s1809_s24 = sadd.s32 4294967295, %s1685_s23   ;;  %s1685_s23 = sphi %s1773_s23, %s31_s23   ;;  %s1681_s22 = sphi %s1771_s22, %s2118_s22   ;;  %s1677_s21 = sphi %s1769_s21, %s2126_s21   ;;  %s1673_s20 = sphi %s1767_s20, %s2116_s20   ;;  %s1669_s19 = sphi %s1765_s19, %s2125_s19   ;;  %s1665_s18 = sphi %s1763_s18, %s2124_s18   ;;  %s1661_s17 = sphi %s1761_s17, %s2123_s17   ;;  %s1657_s16 = sphi %s1759_s16, %s2122_s16   ;;  %s1653_s15 = sphi %s1757_s15, %s2121_s15   ;;  %s1649_s14 = sphi %s1755_s14, %s2120_s14   ;;  %s1645_s13 = sphi %s1753_s13, %s2119_s13  }
  0x18   : > { %2089 = sst [smem:[#allocation27_spill]] %s1673_s20  ;;  %s1052_s25 = sadd.s32 4294967294, %s1685_s23  }
  0x19   : > { %2090 = sst [smem:[#allocation28_spill]] %s1681_s22  ;;  %p64_p0 = scmp.eq.s32.totalorder %s1809_s24, 0 }
  0x1a   : > { %p282_p1 = scmp.ne.s32.totalorder %s1653_s15, %s1649_s14  ;;  %p283_p2 = scmp.eq.s32.totalorder %s1809_s24, 3 }
  0x1b   : > { %p288_p3 = scmp.ne.s32.totalorder %s1649_s14, %s1645_s13  ;;  %p289_p4 = scmp.eq.s32.totalorder %s1052_s25, 3 }
  0x1c   : > { %p1053_p5 = scmp.ge.s32.totalorder %s1685_s23, 1  ;;  %p1819_p6 = por %p283_p2, %p282_p1 }
  0x1d   : > { %p296_p7 = scmp.lt.s32.totalorder %s1685_s23, 5  ;;  %p1824_p8 = por %p289_p4, %p288_p3 }
  0x1e   : > { %s2091_s26 = scalar_select %p1819_p6, 1, 0 }
  0x1f   : > { %s2093_s27 = scalar_select %p1824_p8, 1, 0 }
  0x20   : > { %2092 = sst [smem:[#allocation29_spill]] %s2091_s26  ;;  %p1828_p9 = pnand %p1053_p5, %p296_p7 }
  0x21   : > { %2094 = sst [smem:[#allocation30_spill]] %s2093_s27  ;;  %s1687_s12 = smov [#allocation12]  }
  0x22   : > { %s2096_s2 = sld [smem:[#allocation33_spill]]  ;;  %p1186_p10 = pneg %p1828_p9 }
  0x23   : > { %s309_s25 = sshll.u32 %s1687_s12, 4  ;;  %s2098_s3 = sld [smem:[#allocation34_spill]]  ;;  %s310_s25 = int_to_ptr.vmem [resolvable:$true] %s309_s25 }
  0x24   : > { %p1839_p11 = pnand %p1186_p10, %p64_p0  ;;  %s2072_s29 = smov 64  }
  0x25   : > { %s2074_s30 = smov 4   ;;  %s2099_s5 = sld [smem:[#allocation36_spill]] }
  0x26   : > { %s1690_s7 = smov [#allocation13]   ;;  %s1691_s10 = smov [#allocation16]  }
  0x27   : > { %s324_s8 = sshll.u32 %s1690_s7, 4  ;;  %s350_s27 = sshll.u32 %s1691_s10, 4  ;;  %s325_s8 = int_to_ptr.vmem [resolvable:$true] %s324_s8  ;;  %s351_s27 = int_to_ptr.vmem [resolvable:$true] %s350_s27 }
  0x28   : > { %s307_s11 = sshll.u32 %s2096_s2, 4  ;;  %s2100_s4 = sld [smem:[#allocation35_spill]]  ;;  %s308_s11 = int_to_ptr.hbm [resolvable:$true] %s307_s11 }
  0x29   : > { %s322_s26 = sshll.u32 %s2098_s3, 4  ;;  %s2101_s6 = sld [smem:[#allocation37_spill]]  ;;  %s323_s26 = int_to_ptr.hbm [resolvable:$true] %s322_s26 }
  0x2a   : > { %1189 = dma.hbm_to_vmem [thread:$0]  (!%p1839_p11), %s308_s11, 256, %s310_s25, [#allocation11], %s2072_s29, %s2072_s29, %s2074_s30  }
  0x2b   : > { %s348_s20 = sshll.u32 %s2099_s5, 4  ;;  %s1693_s3 = smov [#allocation18]   ;;  %s349_s20 = int_to_ptr.hbm [resolvable:$true] %s348_s20 }
  0x2c   : > { %1192 = dma.hbm_to_vmem [thread:$0]  (!%p1839_p11), %s323_s26, 16, %s325_s8, [#allocation14]  }
  0x2d   : > { %1198 = dma.hbm_to_vmem [thread:$0]  (!%p1839_p11), %s349_s20, 16, %s351_s27, [#allocation17]  }
  0x2e   : > { %s333_s11 = sshll.u32 %s2100_s4, 4  ;;  %s1692_s26 = smov [#allocation15]   ;;  %s334_s11 = int_to_ptr.hbm [resolvable:$true] %s333_s11 }
  0x2f   : > { %s359_s8 = sshll.u32 %s2101_s6, 4  ;;  %s335_s25 = sshll.u32 %s1692_s26, 4  ;;  %s360_s8 = int_to_ptr.hbm [resolvable:$true] %s359_s8  ;;  %s336_s25 = int_to_ptr.vmem [resolvable:$true] %s335_s25 }
  0x30   : > { %1195 = dma.hbm_to_vmem [thread:$0]  (!%p1839_p11), %s334_s11, 256, %s336_s25, [#allocation14], %s2072_s29, %s2072_s29, %s2074_s30  }
  0x31   : > { %s361_s9 = sshll.u32 %s1693_s3, 4  ;;  %s40_s20 = sadd.s32 1, %s1677_s21  ;;  %s362_s9 = int_to_ptr.vmem [resolvable:$true] %s361_s9 }
  0x32   : > { %1201 = dma.hbm_to_vmem [thread:$0]  (!%p1839_p11), %s360_s8, 512, %s362_s9, [#allocation17], %s2072_s29, %s2072_s29, %s2074_s30  }
  0x33   : > { %s43_s12 = sadd.s32 1, %s1681_s22  ;;  %p41_p12 = scmp.ge.s32.totalorder %s40_s20, 2 }
  0x34   : > { %s50_s10 = sadd.s32 1, %s1665_s18  ;;  %p57_p13 = scmp.ne.s32.totalorder %s1665_s18, %s1661_s17 }
  0x35   : > { %p58_p1 = scmp.eq.s32.totalorder %s1685_s23, 0  ;;  %s2128_s20 = smov (%p41_p12, %s40_s20), 0 }
  0x36   : > { %2102 = sst [smem:[#allocation31_spill]] %s2128_s20  ;;  %s2130_s12 = smov (!%p41_p12, %s43_s12), %s1681_s22 }
  0x37   : > { %p1883_p2 = por %p58_p1, %p57_p13  ;;  %p63_p3 = scmp.ne.s32.totalorder %s1661_s17, %s1657_s16 }
  0x38   : > { %p45_p4 = scmp.ge.s32.totalorder %s2130_s12, 2  ;;  %s268_s27 = ssub.s32 %s1677_s21, %s2128_s20 }
  0x39   : > { %p1893_p5 = por %p64_p0, %p63_p3  ;;  %s272_s2 = sadd.s32 1, %s1653_s15 }
  0x3a   : > { %s2132_s12 = smov (%p45_p4, %s2130_s12), 0  ;;  %p1218_p7 = scmp.lt.s32.totalorder %s1685_s23, 4 }
  0x3b   : > { %2105 = sst [smem:[#allocation32_spill]] %s2132_s12  ;;  %s384_s7 = sand.u32 1, %s1665_s18  }
  0x3c   : > { %s47_s8 = ssub.s32 %s1681_s22, %s2132_s12  ;;  %s1060_s16 = sshll.u32 %s384_s7, 3 }
  0x3d   : > { %p48_p10 = scmp.eq.s32.totalorder %s47_s8, 0  ;;  %s269_s26 = sor.u32 %s268_s27, %s47_s8 }
  0x3e   : > { %p270_p11 = scmp.eq.s32.totalorder %s269_s26, 0  ;;  %s1145_s9 = sshll.u32 %s1681_s22, 3 }
  0x3f   : > { %s1905_s25 = scalar_select %p48_p10, %s1665_s18, %s50_s10  }
  0x40   : > { %s1908_s3 = scalar_select %p270_p11, %s1653_s15, %s272_s2  }
  0x41   : > { %s393_s4 = scalar_lea.hbm %s2056_s0, %s1145_s9  ;;  %s388_s5 = scalar_lea.vmem [#allocation7], %s1060_s16 }
  0x42   : > { %s396_s6 = sshll.u32 %s388_s5, 4  ;;  %s394_s20 = sshll.u32 %s393_s4, 4  ;;  %s397_s6 = int_to_ptr.vmem [resolvable:$true] %s396_s6  ;;  %s395_s20 = int_to_ptr.hbm [resolvable:$true] %s394_s20 }
  0x43   : > { %p1203_p12 = pnand %p1218_p7, %p1883_p2  ;;  %s415_s10 = scalar_lea.hbm %s2057_s1, %s1145_s9 }
  0x44   : > { %s416_s2 = sshll.u32 %s415_s10, 4  ;;  %s385_s26 = scalar_lea.sflag [#allocation8], %s384_s7  ;;  %s417_s2 = int_to_ptr.hbm [resolvable:$true] %s416_s2 }
  0x45   : > { %s2106_s12 = smov 4   ;;  %s2107_s22 = smov 64  }
  0x46   : > { %1205 = dma.hbm_to_vmem [thread:$0]  (!%p1203_p12), %s395_s20, 128, %s397_s6, %s385_s26, %s2107_s22, %s2107_s22, %s2106_s12  }
  0x47   : > { %s410_s29 = scalar_lea.vmem [#allocation10], %s1060_s16  ;;  %s406_s4 = sand.u32 1, %s1685_s23  }
  0x48   : > { %s418_s30 = sshll.u32 %s410_s29, 4  ;;  %s407_s5 = scalar_lea.sflag [#allocation11], %s406_s4  ;;  %s419_s30 = int_to_ptr.vmem [resolvable:$true] %s418_s30 }
  0x49   : > { %1208 = dma.hbm_to_vmem [thread:$0]  (!%p1203_p12), %s417_s2, 128, %s419_s30, %s407_s5, %s2107_s22, %s2107_s22, %s2106_s12  }
  0x4a   : > { %430 = sbr.rel (%p1828_p9) target bundleno = 1085 (0x43d), region = 60  ;;  %s432_s13 = sand.u32 (!%p1828_p9), 1, %s1661_s17  }
  0x4b   : > { %s1067_s7 = sshll.u32 (!%p1828_p9), %s432_s13, 3  ;;  %s433_s9 = scalar_lea.sflag (!%p1828_p9), [#allocation8], %s432_s13 }
  0x4c   : > { %s436_s27 = scalar_lea.vmem (!%p1828_p9), [#allocation7], %s1067_s7 }
  0x4f   : > { %1620 = dma.done.wait (%p1893_p5), %s433_s9, 128  }
  0x50   : > { %1622 = vsyncadd (%p1893_p5), %s433_s9, 4294967168  ;;  %s442_s6 = sand.u32 1, %s1809_s24   ;;  %s446_s16 = scalar_lea.vmem [#allocation10], %s1067_s7 }
  0x51   : > { %s443_s20 = scalar_lea.sflag [#allocation11], %s442_s6 }
  0x52   : > { %1624 = dma.done.wait (%p1893_p5), %s443_s20, 128  }
  0x53   : > { %1626 = vsyncadd (%p1893_p5), %s443_s20, 4294967168 }
  0x54   : > { %1628 = dma.done.wait (%p64_p0), [#allocation11], 256  }
  0x55   : > { %1630 = vsyncadd (%p64_p0), [#allocation11], 4294967040 }
  0x56   : > { %1632 = dma.done.wait (%p64_p0), [#allocation14], 272  }
  0x57   : > { %1634 = vsyncadd (%p64_p0), [#allocation14], 4294967024 }
  0x58   : > { %1636 = dma.done.wait (%p64_p0), [#allocation17], 528  }
  0x59   : > { %1638 = vsyncadd (%p64_p0), [#allocation17], 4294966768  ;;  %s511_s22 = sand.u32 1, %s1649_s14   ;;  %p1075_p9 = scmp.ne.s32.totalorder %s1669_s19, 0 }
  0x5a   : > { %s1074_s28 = sshll.u32 %s511_s22, 4  ;;  %s1694_s24 = smov (!%p1075_p9), 96  }
  0x5b   : > { %s1955_s12 = scalar_lea.vmem [#allocation19], %s1074_s28  ;;  %518 = sbr.rel (%p1075_p9) target bundleno = 534 (0x216), region = 92 }
  0x5c   : > { %s1695_s11 = smov (!%p1075_p9), 64  }
  0x60   : > { %v1150_v0 = vld [vmem:[#allocation12 + $0x8] sm:$0xff]  ;;  %v1152_v1 = vld [vmem:[#allocation15 + $0x8] sm:$0xff]  ;;  %v1151_v3 = vld [vmem:[#allocation15] sm:$0xff]  ;;  %vm548_vm0 = vcmask 261120   ;;  %vm622_vm1 = vcmask 257024   ;;  %vm734_vm2 = vcmask 125952  }
  0x61   : > { %v1149_v2 = vld [vmem:[#allocation12] sm:$0xff]  ;;  %558 = vmatpush.bf16.msra.mxu0 %v1150_v0  ;;  %600 = vmatpush.bf16.msra.mxu1 %v1152_v1  ;;  %v1148_v5 = vld [vmem:[%s446_s16] sm:$0xff] }
  0x62   : > { %v1147_v4 = vld [vmem:[%s436_s27] sm:$0xff]  ;;  %v1324_v6 = vld [vmem:[#allocation13] ss:$0 sm:$0xff]  ;;  %v1155_v28 = vld [vmem:[#allocation18 + $0x10] sm:$0xff] }
  0x63   : > { %v1325_v7 = vld [vmem:[#allocation16] ss:$0 sm:$0xff]  ;;  %v1153_v31 = vld [vmem:[#allocation18] sm:$0xff]  ;;  %v1154_v33 = vld [vmem:[#allocation18 + $0x8] sm:$0xff] }
  0x64   : > { %v1156_v32 = vld [vmem:[#allocation18 + $0x18] sm:$0xff] }
  0x65   : > { %559 = vmatpush.bf16.msra.mxu0 %v1149_v2  ;;  %601 = vmatpush.bf16.msra.mxu1 %v1151_v3 }
  0x68   : > { %1088 = vmatmul.msk.bf16.vlgmr.msra.gmra.mxu0 %vm548_vm0, %v1147_v4  ;;  %1101 = vmatmul.msk.bf16.vlgmr.msra.gmra.mxu1 %vm548_vm0, %v1148_v5 }
  0xe5   : > { %v561_v8 = vpop.f32.mrf.mxu0  ;;  %v603_v9 = vpop.f32.mrf.mxu1 }
  0xe6   : > { %v562_v10 = vadd.f32 %v1324_v6, %v561_v8  ;;  %v604_v11 = vadd.f32 %v1325_v7, %v603_v9 }
  0xe8   : > { %608 = vst.msk [vmem:[#allocation2] sm:$0xff] %vm548_vm0, %v562_v10  ;;  %v625_v12 = vpack.c.bf16 %v604_v11, %v604_v11  ;;  %v612_v13 = vpack.c.bf16 %v562_v10, %v562_v10 }
  0xe9   : > { %610 = vst.msk [vmem:[#allocation3] sm:$0xff] %vm548_vm0, %v604_v11 }
  0xea   : > { %629 = vrot.lane.b32.xlu2 %v625_v12, %s1694_s24  ;;  %616 = vrot.lane.b32.xlu1 %v612_v13, %s1694_s24 }
  0xed   : > { %v563_v14 = vpop.f32.mrf.mxu0  ;;  %v605_v15 = vpop.f32.mrf.mxu1 }
  0xee   : > { %v564_v16 = vadd.f32 %v1324_v6, %v563_v14  ;;  %v606_v17 = vadd.f32 %v1325_v7, %v605_v15 }
  0xf0   : > { %609 = vst.msk [vmem:[#allocation2 + $0x8] sm:$0xff] %vm548_vm0, %v564_v16  ;;  %v638_v18 = vpack.c.bf16 %v606_v17, %v604_v11  ;;  %v626_v19 = vpack.c.bf16 %v606_v17, %v606_v17  ;;  %v613_v20 = vpack.c.bf16 %v564_v16, %v564_v16  ;;  %v637_v21 = vpack.c.bf16 %v564_v16, %v562_v10 }
  0xf1   : > { %611 = vst.msk [vmem:[#allocation3 + $0x8] sm:$0xff] %vm548_vm0, %v606_v17 }
  0xf2   : > { %659 = vrot.lane.b32.xlu0 %v638_v18, %s1695_s11  ;;  %631 = vrot.lane.b32.xlu2 %v626_v19, %s1694_s24 }
  0xf3   : > { %618 = vrot.lane.b32.xlu1 %v613_v20, %s1694_s24 }
  0xfa   : > { %700 = vrot.lane.b32.xlu0 %v637_v21, %s1695_s11 }
 0x144   : > { %v630_v22 = vpop.permute.xlu2 %629 }
 0x145   : > { %635 = vst.msk [vmem:[#allocation5] sm:$0xf] %vm622_vm1, %v630_v22 }
 0x14c   : > { %v632_v23 = vpop.permute.xlu2 %631 }
 0x14d   : > { %636 = vst.msk [vmem:[#allocation5 + $0x4] sm:$0xf] %vm622_vm1, %v632_v23 }
 0x15c   : > { %v617_v24 = vpop.permute.xlu1 %616 }
 0x15d   : > { %623 = vst.msk [vmem:[#allocation4] sm:$0xf] %vm622_vm1, %v617_v24 }
 0x164   : > { %v660_v25 = vpop.permute.xlu0 %659 }
 0x165   : > { %v619_v26 = vpop.permute.xlu1 %618  ;;  %v668_v27 = vsel %vm548_vm0, %v660_v25, 0 }
 0x166   : > { %624 = vst.msk [vmem:[#allocation4 + $0x4] sm:$0xf] %vm622_vm1, %v619_v26  ;;  %677 = vmatpush.bf16.xpose.msra.mxu2 %v668_v27 }
 0x16c   : > { %v701_v29 = vpop.permute.xlu0 %700 }
 0x16d   : > { %1110 = vmatmul.msk.bf16.vlgmr.msra.gmra.mxu2 %vm548_vm0, %v1155_v28  ;;  %v709_v30 = vsel %vm548_vm0, %v701_v29, 0 }
 0x16e   : > { %718 = vmatpush.bf16.xpose.msra.mxu3 %v709_v30 }
 0x175   : > { %1120 = vmatmul.msk.bf16.vlgmr.msra.gmra.mxu3 %vm548_vm0, %v1153_v31 }
 0x17d   : > { %1111 = vmatmul.msk.bf16.gmra.mxu2 %vm548_vm0, %v1156_v32 }
 0x185   : > { %1121 = vmatmul.msk.bf16.gmra.mxu3 %vm548_vm0, %v1154_v33 }
 0x1f0   : > { %v679_v34 = vpop.f32.mrf.mxu2 }
 0x1f8   : > { %v720_v35 = vpop.f32.mrf.mxu3  ;;  %v681_v38 = vpop.f32.mrf.mxu2 }
 0x1f9   : > { %v721_v36 = vadd.f32 %v720_v35, %v679_v34 }
 0x1fb   : > { %v730_v37 = vpack.c.bf16 %v721_v36, %v721_v36 }
 0x1fd   : > { %735 = vst.msk [vmem:[#allocation6] sm:$0xf] %vm734_vm2, %v730_v37 }
 0x200   : > { %v722_v39 = vpop.f32.mrf.mxu3  ;;  %v684_v42 = vpop.f32.mrf.mxu2 }
 0x201   : > { %v723_v40 = vadd.f32 %v722_v39, %v681_v38 }
 0x203   : > { %v731_v41 = vpack.c.bf16 %v723_v40, %v723_v40 }
 0x205   : > { %736 = vst.msk [vmem:[#allocation6 + $0x4] sm:$0xf] %vm734_vm2, %v731_v41 }
 0x208   : > { %v725_v43 = vpop.f32.mrf.mxu3  ;;  %v686_v46 = vpop.f32.mrf.mxu2 }
 0x209   : > { %v726_v44 = vadd.f32 %v725_v43, %v684_v42 }
 0x20b   : > { %v732_v45 = vpack.c.bf16 %v726_v44, %v726_v44 }
 0x20d   : > { %737 = vst.msk [vmem:[#allocation6 + $0x8] sm:$0xf] %vm734_vm2, %v732_v45 }
 0x210   : > { %v727_v47 = vpop.f32.mrf.mxu3 }
 0x211   : > { %v728_v48 = vadd.f32 %v727_v47, %v686_v46 }
 0x213   : > { %v733_v49 = vpack.c.bf16 %v728_v48, %v728_v48 }
 0x215   : > { %738 = vst.msk [vmem:[#allocation6 + $0xc] sm:$0xf] %vm734_vm2, %v733_v49 }
 0x216 PF: > { %v1158_v50 = vld [vmem:[#allocation5] sm:$0xff]  ;;  %vm764_vm3 = vcmask 261120   ;;  %v1157_v51 = vld [vmem:[#allocation4] sm:$0xff]  ;;  %s2108_s2 = sld [smem:[#allocation40_spill]]  ;;  %v749_v52 = vld [vmem:[#allocation3] sm:$0xff]  ;;  %vm810_vm4 = vcmask 130048  }
 0x217   : > { %s2109_s4 = sld [smem:[#allocation39_spill]]  ;;  %v750_v53 = vld [vmem:[#allocation3 + $0x8] sm:$0xff]  ;;  %v769_v55 = vsel %vm764_vm3, %v1158_v50, 0  ;;  %v794_v56 = vsel %vm764_vm3, %v1157_v51, 0  ;;  %v743_v57 = vld [vmem:[#allocation2] sm:$0xff]  ;;  %v744_v58 = vld [vmem:[#allocation2 + $0x8] sm:$0xff] }
 0x218   : > { %778 = vmatpush.bf16.xpose.msra.mxu0 %v769_v55  ;;  %803 = vmatpush.bf16.xpose.msra.mxu1 %v794_v56  ;;  %s2110_s9 = sld [smem:[#allocation38_spill]]  ;;  %s1132_s6 = sshll.u32 %s1669_s19, 4 }
 0x219   : > { %s835_s20 = sshra.s32 %s1132_s6, 3  ;;  %s2111_s28 = sld [smem:[#allocation27_spill]] }
 0x21a   : > { %s1133_s16 = sshll.u32 %s835_s20, 2  ;;  %s1140_s11 = sshll.u32 %s1669_s19, 1 }
 0x21b   : > { %s838_s24 = scalar_lea.vmem [#allocation6], %s1133_s16  ;;  %s886_s13 = sshll.u32 %s1955_s12, 4  ;;  %s887_s13 = int_to_ptr.vmem [resolvable:$true] %s886_s13 }
 0x21c   : > { %s741_s26 = scalar_lea.vmem %s2108_s2, %s1669_s19  ;;  %v1159_v20 = vld [vmem:[%s838_s24] sm:$0xff] }
 0x21d   : > { %s739_s5 = scalar_lea.vmem %s2109_s4, %s1669_s19  ;;  %v1326_v54 = vld [vmem:[%s741_s26] ss:$0 sm:$0xff]  ;;  %v853_v21 = vsel %vm810_vm4, %v1159_v20, 0  ;;  %s2113_s4 = sld [smem:[#allocation41_spill]] }
 0x21e   : > { %v752_v59 = vmul.f32 %v1326_v54, %v749_v52  ;;  %v753_v60 = vmul.f32 %v1326_v54, %v750_v53  ;;  %v1327_v61 = vld [vmem:[%s739_s5] ss:$0 sm:$0xff]  ;;  %s841_s27 = scalar_lea.vmem %s2110_s9, %s1669_s19  ;;  %862 = vmatpush.bf16.xpose.msra.mxu2 %v853_v21  ;;  %s872_s19 = scalar_lea.sflag [#allocation9], %s511_s22 }
 0x21f   : > { %v746_v62 = vmul.f32 %v1327_v61, %v743_v57  ;;  %v747_v63 = vmul.f32 %v1327_v61, %v744_v58  ;;  %s1141_s8 = sshll.u32 %s2111_s28, 2  ;;  %v1328_v29 = vld [vmem:[%s841_s27] ss:$0 sm:$0xff] }
 0x220   : > { %v754_v0 = vpack.c.bf16 %v753_v60, %v752_v59  ;;  %s883_s10 = sadd.s32 %s1141_s8, %s1140_s11 }
 0x221   : > { %v748_v1 = vpack.c.bf16 %v747_v63, %v746_v62  ;;  %s1142_s2 = sshll.u32 %s883_s10, 3 }
 0x222   : > { %1126 = vmatmul.msk.bf16.vlgmr.msra.gmra.mxu0 %vm764_vm3, %v754_v0 }
 0x223   : > { %1131 = vmatmul.msk.bf16.vlgmr.msra.gmra.mxu1 %vm764_vm3, %v748_v1  ;;  %s885_s5 = scalar_lea.hbm %s2113_s4, %s1142_s2  ;;  %s1567_s16 = scalar_lea.hbm %s2113_s4, 64 }
 0x224   : > { %s888_s7 = sshll.u32 %s885_s5, 4  ;;  %s889_s7 = int_to_ptr.hbm [resolvable:$true] %s888_s7 }
 0x225   : > { %s1561_s9 = sshra.s32 %s889_s7, 4  ;;  %s1562_s9 = int_to_ptr.hbm [resolvable:$true] %s1561_s9 }
 0x226   : > { %s1563_s27 = scalar_lea.hbm %s1562_s9, 16  ;;  %p1568_p2 = scmp.lt.s32.totalorder %s1562_s9, %s2113_s4 }
 0x227   : > { %p1564_p0 = scmp.ne.s32.totalorder %s1562_s9, %s1563_s27  ;;  %p1569_p3 = scmp.lt.s32.totalorder %s1567_s16, %s1563_s27 }
 0x229   : > { %p1565_p13 = pnand %p1564_p0, %p1819_p6  ;;  %p1570_p4 = por %p1569_p3, %p1568_p2 }
 0x22b   : > { %p1566_p1 = pneg %p1565_p13 }
 0x22d   : > { %p1571_p5 = pnand %p1570_p4, %p1566_p1 }
 0x29f   : > { %v780_v2 = vpop.f32.mrf.mxu0 }
 0x2a0   : > { %v805_v3 = vpop.f32.mrf.mxu1 }
 0x2a1   : > { %v806_v4 = vadd.f32 %v805_v3, %v780_v2 }
 0x2a3   : > { %v811_v5 = vsel %vm810_vm4, %v806_v4, -inf }
 0x2a4   : > { %812 = vmax.xlane.f32.xlu0 %v811_v5 }
 0x2a7   : > { %v782_v6 = vpop.f32.mrf.mxu0 }
 0x2a8   : > { %v807_v7 = vpop.f32.mrf.mxu1 }
 0x2a9   : > { %v808_v8 = vadd.f32 %v807_v7, %v782_v6 }
 0x2ab   : > { %v814_v9 = vsel %vm810_vm4, %v808_v8, -inf }
 0x2ac   : > { %815 = vmax.xlane.f32.xlu0 %v814_v9 }
 0x317   : > { %v813_v10 = vpop.xlane.xlu0 %812 }
 0x318   : > { %v817_v11 = vsub.f32 %v806_v4, %v813_v10 }
 0x31a   : > { %v819_v12 = vmul.f32 1.442695, %v817_v11 }
 0x31c   : > { %1329 = vpow2.f32 %v819_v12 }
 0x31f   : > { %v816_v13 = vpop.xlane.xlu0 %815 }
 0x320   : > { %v818_v14 = vsub.f32 %v808_v8, %v816_v13 }
 0x322   : > { %v1330_v15 = vpop.eup %1329  ;;  %v821_v16 = vmul.f32 1.442695, %v818_v14 }
 0x323   : > { %v823_v17 = vsel %vm810_vm4, %v1330_v15, 0.0 }
 0x324   : > { %1331 = vpow2.f32 %v821_v16  ;;  %824 = vadd.xlane.f32.xlu1 %v823_v17 }
 0x32a   : > { %v1332_v18 = vpop.eup %1331 }
 0x32b   : > { %v826_v19 = vsel %vm810_vm4, %v1332_v18, 0.0 }
 0x32c   : > { %827 = vadd.xlane.f32.xlu1 %v826_v19 }
 0x397   : > { %v825_v22 = vpop.xlane.xlu1 %824 }
 0x398   : > { %1333 = vrcp.f32 %v825_v22 }
 0x39e   : > { %v1334_v24 = vpop.eup %1333 }
 0x39f   : > { %v828_v23 = vpop.xlane.xlu1 %827  ;;  %v831_v26 = vmul.f32 %v1334_v24, %v1330_v15 }
 0x3a0   : > { %1335 = vrcp.f32 %v828_v23 }
 0x3a6   : > { %v1336_v25 = vpop.eup %1335 }
 0x3a7   : > { %v832_v27 = vmul.f32 %v1336_v25, %v1332_v18 }
 0x3a9   : > { %v833_v28 = vpack.c.bf16 %v832_v27, %v831_v26 }
 0x3ab   : > { %1138 = vmatmul.msk.bf16.vlgmr.msra.gmra.mxu2 %vm810_vm4, %v833_v28 }
 0x42e   : > { %v864_v30 = vpop.f32.mrf.mxu2 }
 0x42f   : > { %v865_v31 = vadd.f32 %v1328_v29, %v864_v30 }
 0x431   : > { %869 = vst.msk [vmem:[%s1955_s12] sm:$0xff] %vm810_vm4, %v865_v31 }
 0x436   : > { %v866_v32 = vpop.f32.mrf.mxu2 }
 0x437   : > { %v867_v33 = vadd.f32 %v1328_v29, %v866_v32 }
 0x439   : > { %870 = vst.msk [vmem:[%s1955_s12 + $0x8] sm:$0xff] %vm810_vm4, %v867_v33 }
 0x43a   : > { %1574 = shalt.err (!%p1571_p5)
}
 0x43b   : > { %s1696_s22 = smov 128   ;;  %s1697_s12 = smov 8  }
 0x43c   : > { %1184 = dma.vmem_to_hbm [thread:$0]  (%p1819_p6), %s887_s13, 256, %s889_s7, %s872_s19, %s1696_s22, %s1696_s22, %s1697_s12  }
 0x43d PF: > { %s2114_s11 = sld [smem:[#allocation26_spill]]  ;;  %p1224_p7 = scmp.ge.s32.totalorder %s1685_s23, 2 }
 0x43f   : > { %p1210_p10 = pnand %p1224_p7, %p1824_p8 }
 0x441   : > { %p1211_p11 = pneg %p1210_p10 }
 0x443   : > { %s903_s10 = sand.u32 1, %s2114_s11  }
 0x444   : > { %s904_s2 = scalar_lea.sflag [#allocation9], %s903_s10 }
 0x445   : > { %1640 = dma.done.wait (%p1211_p11), %s904_s2, 256  }
 0x446   : > { %1642 = vsyncadd (%p1211_p11), %s904_s2, 4294967040  ;;  %s31_s23 = sadd.s32 1, %s1685_s23   ;;  %s2116_s20 = sld [smem:[#allocation28_spill]] }
 0x447   : > { %p28_p12 = scmp.ge.s32.totalorder %s31_s23, 6   ;;  %s2117_s26 = sld [smem:[#allocation31_spill]] }
 0x448   : > { %s2118_s22 = sld [smem:[#allocation32_spill]]  ;;  %s2119_s13 = smov %s1649_s14 }
 0x449   : > { %s2120_s14 = smov %s1653_s15  ;;  %s2121_s15 = smov %s1908_s3 }
 0x44a   : > { %s2122_s16 = smov %s1661_s17  ;;  %s2123_s17 = smov %s1665_s18 }
 0x44b   : > { %s2124_s18 = smov %s1905_s25  ;;  %s2125_s19 = smov %s1677_s21 }
 0x44c   :  { %30 = sbr.rel (!%p28_p12) target bundleno = 23 (0x17), region = 147 }
 0x44d   : > { %s2126_s21 = smov %s2117_s26 }
 0x451   :  { %910 = vsyncpa [#allocation8], 1 }
 0x452   :  { %912 = vsyncpa [#allocation8 + $0x1], 1 }
 0x453   :  { %913 = vsyncpa [#allocation11], 1 }
 0x454   :  { %915 = vsyncpa [#allocation11 + $0x1], 1 }
 0x455   :  { %916 = vsyncpa [#allocation14], 1 }
 0x456   :  { %917 = vsyncpa [#allocation17], 1 }
 0x457   :  { %918 = vsyncpa [#allocation9], 1 }
 0x458   :  { %920 = vsyncpa [#allocation9 + $0x1], 1 }

</bundles_post_ra>
